<compile_context>
chip_gen: v6e
topology: v6e:2x2x1
jax: 0.10.0
libtpu: 0.0.40
codegen_flags: <defaults>
</compile_context>

<pallas_src>
import functools

import jax
import jax.numpy as jnp
from jax import lax
from jax.experimental import pallas as pl
from jax.experimental.pallas import tpu as pltpu


_NEG = -1e30        # "minus infinity" for the top-knn carry
_PAD_BIAS = -4.0    # similarity emitted for padded cache columns (< any cosine)


def _round_up(x, m):
    return (x + m - 1) // m * m


def _cache_forward_kernel(x_ref, featT_ref, tw2v_ref, w2vT_ref, out_ref,
                          sims_ref, topk_ref, acc_ref, xn_ref, gate_ref,
                          *, knn, inv_temp, feat_dim):
    p = pl.program_id(1)          # 0: sims + running top-knn, 1: accumulate
    j = pl.program_id(2)          # cache tile index
    nt = pl.num_programs(2)
    neg = jnp.float32(_NEG)
    tb = topk_ref.shape[0]

    # ---------------- phase 0: sims + running top-knn -------------------------
    @pl.when(p == 0)
    def _phase0():
        @pl.when(j == 0)
        def _init():
            topk_ref[...] = jnp.full_like(topk_ref, neg)
            acc_ref[...] = jnp.zeros_like(acc_ref)
            # Hoisted query l2-normalization + bf16 cast: once per batch tile
            # instead of once per cache tile.
            x = x_ref[...]
            xn = x * lax.rsqrt(jnp.maximum(
                jnp.sum(x * x, axis=-1, keepdims=True), jnp.float32(1e-24)))
            dlane = lax.broadcasted_iota(jnp.int32, xn.shape, 1)
            # Bias lane: 1.0 * featT[feat_dim, padded cols] == _PAD_BIAS, so the
            # MXU itself masks padded cache columns -> no per-tile column mask.
            xn = jnp.where(dlane == feat_dim, jnp.float32(1.0), xn)
            xn_ref[...] = xn.astype(xn_ref.dtype)

        # cosine sims for this cache tile: (tb, d_pad) @ (d_pad, tile_n) on MXU.
        s = jnp.dot(xn_ref[...], featT_ref[...],
                    preferred_element_type=jnp.float32)
        s_c = s.astype(sims_ref.dtype)
        sims_ref[j] = s_c                                    # reused in phase 1

        # ---- data-dependent gate for the top-knn peel ------------------------
        carry = topk_ref[...]                                # (tb, 128)
        lane = lax.broadcasted_iota(jnp.int32, carry.shape, 1)
        row_kth = jnp.min(jnp.where(lane < knn, carry, jnp.float32(jnp.inf)),
                          axis=-1, keepdims=True)            # (tb, 1)
        row_max = jnp.max(s_c, axis=-1, keepdims=True).astype(jnp.float32)
        gate_ref[...] = jnp.max(row_max - row_kth, axis=0, keepdims=True)

        @pl.when(gate_ref[0, 0] > 0.0)
        def _peel():
            # Merge this tile into the running (descending) top-knn carry.
            # 8-row chunks keep the live set tiny (no vreg spills); the peel
            # only runs on tiles that actually contain new top-knn candidates.
            cr_rows = 8
            tile = sims_ref.at[j]

            def chunk(c, carry_dummy):
                r0 = pl.multiple_of(c * cr_rows, cr_rows)
                w = tile[pl.ds(r0, cr_rows), :].astype(jnp.float32)
                cr = topk_ref[pl.ds(r0, cr_rows), :]
                cl = lax.broadcasted_iota(jnp.int32, cr.shape, 1)
                new_cr = jnp.full_like(cr, neg)
                for i in range(knn):                         # knn small & static
                    cur = jnp.maximum(jnp.max(w, axis=-1, keepdims=True),
                                      jnp.max(cr, axis=-1, keepdims=True))
                    new_cr = jnp.where(cl == i, cur, new_cr)
                    # NOTE: exact float ties with `cur` collapse into one slot
                    # (differs from torch.kthvalue only for duplicated values).
                    w = jnp.where(w >= cur, neg, w)
                    cr = jnp.where(cr >= cur, neg, cr)
                topk_ref[pl.ds(r0, cr_rows), :] = new_cr
                return carry_dummy

            lax.fori_loop(0, tb // cr_rows, chunk, 0)

    # ---------------- phase 1: masked-softmax accumulate ----------------------
    @pl.when(p == 1)
    def _phase1():
        tk = topk_ref[...]
        rowmax = jnp.max(tk, axis=-1, keepdims=True)         # top-1 (reused)
        lane = lax.broadcasted_iota(jnp.int32, tk.shape, 1)
        thresh = jnp.min(jnp.where(lane < knn, tk, jnp.float32(jnp.inf)),
                         axis=-1, keepdims=True)             # knn-th largest
        s = sims_ref[j].astype(jnp.float32)
        # fused knn-mask + softmax numerator; the denominator cancels against
        # the downstream l2-normalize and is never materialized.
        e = jnp.where(s >= thresh,
                      jnp.exp((s - rowmax) * jnp.float32(inv_temp)),
                      jnp.float32(0.0))
        acc_ref[...] += jnp.dot(e.astype(jnp.bfloat16), tw2v_ref[...],
                                preferred_element_type=jnp.float32)

        @pl.when(j == nt - 1)
        def _finalize():
            acc = acc_ref[...]
            sync = acc * lax.rsqrt(jnp.maximum(
                jnp.sum(acc * acc, axis=-1, keepdims=True), jnp.float32(1e-24)))
            out_ref[...] = jnp.dot(sync.astype(jnp.bfloat16), w2vT_ref[...],
                                   preferred_element_type=jnp.float32
                                   ).astype(out_ref.dtype)


def prepare_cache_params(features, targets_w2v, w2v, *, tile_n=512):
    """One-time (init-time) packing of the cache parameters.

    Transposes, pads lane dims to multiples of 128, casts to bf16 and adds a
    bias row (row `D`) to featT so padded cache columns come out of the matmul
    already "masked" at _PAD_BIAS. For production shapes sweep tile_n upward
    (512-1024) to amortize per-grid-step overhead.
    """
    features = jnp.asarray(features, jnp.float32)
    targets_w2v = jnp.asarray(targets_w2v, jnp.float32)
    w2v = jnp.asarray(w2v, jnp.float32)
    N, D = features.shape
    C, Dw = w2v.shape
    assert targets_w2v.shape == (N, Dw)
    assert tile_n % 128 == 0

    d_pad = _round_up(D + 1, 128)          # +1: bias row masking padded columns
    n_pad = _round_up(N, tile_n)
    dw_pad = _round_up(Dw, 128)
    c_pad = _round_up(C, 128)

    featT = jnp.zeros((d_pad, n_pad), jnp.bfloat16)
    featT = featT.at[:D, :N].set(features.T.astype(jnp.bfloat16))
    if n_pad > N:
        featT = featT.at[D, N:].set(_PAD_BIAS)
    tw2v = jnp.zeros((n_pad, dw_pad), jnp.bfloat16)
    tw2v = tw2v.at[:N, :Dw].set(targets_w2v.astype(jnp.bfloat16))
    w2vT = jnp.zeros((dw_pad, c_pad), jnp.bfloat16)
    w2vT = w2vT.at[:Dw, :C].set(w2v.T.astype(jnp.bfloat16))

    return dict(featT=featT, tw2v=tw2v, w2vT=w2vT,
                n_valid=N, n_classes=C, feat_dim=D, tile_n=tile_n)


def cache_forward(x, params, *, knn=8, temperature=0.1,
                  sims_dtype=jnp.float32,
                  vmem_budget_bytes=40 * 1024 * 1024):
    """Pallas equivalent of cache.forward (sim_func='cosine_softmax').

    sims_dtype=jnp.bfloat16 halves the largest VMEM consumer (the cached sims)
    at the cost of possible exact ties at the knn threshold; default is f32.
    vmem_budget_bytes defaults to 40 MiB (v7x-safe); raise it on v5e/v6e
    (128 MiB VMEM) for larger caches / batch tiles.
    """
    x = jnp.asarray(x, jnp.float32)
    B, D = x.shape
    featT, tw2v, w2vT = params["featT"], params["tw2v"], params["w2vT"]
    n_valid, C = params["n_valid"], params["n_classes"]
    tile_n = params["tile_n"]
    assert params["feat_dim"] == D
    d_pad, n_pad = featT.shape
    dw_pad, c_pad = w2vT.shape
    assert tw2v.shape == (n_pad, dw_pad)
    nt = n_pad // tile_n
    assert 1 <= knn <= 128 and knn <= n_valid

    sims_itemsize = jnp.dtype(sims_dtype).itemsize

    def _vmem_bytes(tb):
        scratch = (tb * n_pad * sims_itemsize   # cached sims
                   + tb * 128 * 4               # top-knn carry
                   + tb * dw_pad * 4            # p @ targets_w2v accumulator
                   + tb * d_pad * 2             # normalized query (bf16)
                   + 4)                         # peel gate
        pipe = 2 * (tb * d_pad * 4              # x block (double-buffered)
                    + d_pad * tile_n * 2        # featT tile
                    + tile_n * dw_pad * 2       # targets_w2v tile
                    + dw_pad * c_pad * 2        # w2vT (resident, 2 bufs)
                    + tb * c_pad * 4)           # out block
        return scratch + pipe

    # Batch tile: up to 256 rows (fills the 256-wide MXU on v6e/v7x, raises
    # arithmetic intensity for multi-tile batches), shrunk to fit the budget.
    tb = min(256, _round_up(B, 8))
    while tb > 8 and _vmem_bytes(tb) > vmem_budget_bytes:
        tb = max(8, _round_up(tb // 2, 8))
    assert _vmem_bytes(tb) <= vmem_budget_bytes, (
        "cache too large for the VMEM budget: raise vmem_budget_bytes, use "
        "sims_dtype=jnp.bfloat16, or reduce tile_n")
    b_pad = _round_up(B, tb)
    nb = b_pad // tb

    xp = jnp.zeros((b_pad, d_pad), jnp.float32).at[:B, :D].set(x)

    kernel = functools.partial(_cache_forward_kernel, knn=knn,
                               inv_temp=1.0 / float(temperature), feat_dim=D)
    vmem_limit = max(32 * 1024 * 1024,
                     min(int(_vmem_bytes(tb) * 1.3) + (4 << 20), 112 << 20))

    out = pl.pallas_call(
        kernel,
        out_shape=jax.ShapeDtypeStruct((b_pad, c_pad), jnp.float32),
        grid_spec=pltpu.PrefetchScalarGridSpec(
            num_scalar_prefetch=0,
            grid=(nb, 2, nt),
            in_specs=[
                # query block (f32; normalized once per batch tile in-kernel)
                pl.BlockSpec((tb, d_pad), lambda bi, p, j: (bi, 0)),
                # featT tiles: walked in phase 0, frozen (no re-fetch) in phase 1
                pl.BlockSpec((d_pad, tile_n),
                             lambda bi, p, j: (0, j * (1 - p) + (nt - 1) * p)),
                # targets_w2v tiles: frozen in phase 0, walked in phase 1
                pl.BlockSpec((tile_n, dw_pad), lambda bi, p, j: (j * p, 0)),
                # class-embedding matrix: resident (small for this module's C)
                pl.BlockSpec((dw_pad, c_pad), lambda bi, p, j: (0, 0)),
            ],
            out_specs=pl.BlockSpec((tb, c_pad), lambda bi, p, j: (bi, 0)),
            scratch_shapes=[
                pltpu.VMEM((nt, tb, tile_n), sims_dtype),    # cached sims
                pltpu.VMEM((tb, 128), jnp.float32),          # top-knn carry
                pltpu.VMEM((tb, dw_pad), jnp.float32),       # p @ tw2v acc
                pltpu.VMEM((tb, d_pad), jnp.bfloat16),       # normalized query
                pltpu.VMEM((1, 1), jnp.float32),             # peel gate
            ]),
        compiler_params=pltpu.CompilerParams(
            dimension_semantics=("parallel", "arbitrary", "arbitrary"),
            vmem_limit_bytes=vmem_limit),
    )(xp, featT, tw2v, w2vT)

    return out[:B, :C]


# ----------------------------- reference & demo -------------------------------

def _l2norm(a, axis=-1, eps=1e-12):
    n = jnp.sqrt(jnp.sum(a * a, axis=axis, keepdims=True))
    return a / jnp.maximum(n, eps)


def _reference_forward(x, featT_bf16, n_valid, targets_w2v, w2v,
                       *, knn, temperature):
    """Pure-JAX mirror of the PyTorch forward.

    Uses the same bf16 featT operand as the kernel so the hard knn-threshold
    selection is made on identical similarity values; everything else is f32.
    """
    xn = x * lax.rsqrt(jnp.maximum(jnp.sum(x * x, axis=-1, keepdims=True),
                                   jnp.float32(1e-24)))
    d_pad = featT_bf16.shape[0]
    xn_p = jnp.pad(xn, ((0, 0), (0, d_pad - x.shape[1])))
    sims = jnp.dot(xn_p.astype(jnp.bfloat16), featT_bf16[:, :n_valid],
                   preferred_element_type=jnp.float32)
    thresh = lax.top_k(sims, knn)[0][:, -1:]          # knn-th largest per row
    sims = jnp.where(sims < thresh, jnp.float32(-1000.0), sims)
    p = jax.nn.softmax(sims / temperature, axis=-1)
    sync = _l2norm(p @ targets_w2v)
    return sync @ w2v.T


if __name__ == "__main__":
    # Small synthetic shapes consistent with the module:
    #   N cache entries, D visual-feature dim, C classes, Dw word2vec dim.
    # N=200 with tile_n=128 exercises multi-tile streaming, the bias-row
    # masking of padded cache columns and the gated top-knn peel.
    B, D, N, C, Dw = 8, 32, 200, 16, 32
    knn, temperature = 8, 0.1

    key = jax.random.PRNGKey(0)
    k1, k2, k3, k4 = jax.random.split(key, 4)

    # __init__-style preprocessing (plain JAX glue, one-time):
    #   features / w2v are l2-normalized, targets_w2v = w2v[targets].
    features = _l2norm(jax.random.normal(k1, (N, D), jnp.float32))
    w2v = _l2norm(jax.random.normal(k2, (C, Dw), jnp.float32))
    targets = jax.random.randint(k3, (N,), 0, C)
    targets_w2v = w2v[targets]                         # (N, Dw)
    x = jax.random.normal(k4, (B, D), jnp.float32)

    params = prepare_cache_params(features, targets_w2v, w2v, tile_n=128)

    logits = cache_forward(x, params, knn=knn, temperature=temperature)
    logits = jax.block_until_ready(logits)
    assert logits.shape == (B, C)
    assert bool(jnp.all(jnp.isfinite(logits)))

    ref = _reference_forward(x, params["featT"], N, targets_w2v, w2v,
                             knn=knn, temperature=temperature)
    err = float(jnp.max(jnp.abs(logits - ref)))
    assert err < 3e-2, f"mismatch vs reference: max abs err = {err}"

    print("KERNEL_OK")
</pallas_src>

<mosaic_0001>
module attributes {stable_mosaic.version = 11 : i64} {
  func.func @_cache_forward_kernel(%arg0: i32, %arg1: i32, %arg2: i32, %arg3: memref<8x128xf32, #tpu.memory_space<vmem>>, %arg4: memref<128x128xbf16, #tpu.memory_space<vmem>>, %arg5: memref<128x128xbf16, #tpu.memory_space<vmem>>, %arg6: memref<128x128xbf16, #tpu.memory_space<vmem>>, %arg7: memref<8x128xf32, #tpu.memory_space<vmem>>, %arg8: memref<2x8x128xf32, #tpu.memory_space<vmem>>, %arg9: memref<8x128xf32, #tpu.memory_space<vmem>>, %arg10: memref<8x128xf32, #tpu.memory_space<vmem>>, %arg11: memref<8x128xbf16, #tpu.memory_space<vmem>>, %arg12: memref<1x1xf32, #tpu.memory_space<vmem>>) attributes {dimension_semantics = [#tpu.dimension_semantics<parallel>, #tpu.dimension_semantics<arbitrary>, #tpu.dimension_semantics<arbitrary>], iteration_bounds = array<i64: 1, 2, 2>, scalar_prefetch = 0 : i64, scratch_operands = 5 : i64, tpu.core_type = #tpu.core_type<tc>, window_params = [{transform_indices = @transform_0, window_bounds = array<i64: 8, 128>}, {transform_indices = @transform_1, window_bounds = array<i64: 128, 128>}, {transform_indices = @transform_2, window_bounds = array<i64: 128, 128>}, {pipeline_mode = #tpu.pipeline_mode<synchronous>, transform_indices = @transform_3, window_bounds = array<i64: 128, 128>}, {transform_indices = @transform_4, window_bounds = array<i64: 8, 128>}]} {
    %c0_i32 = arith.constant 0 : i32
    %0 = arith.cmpi eq, %arg1, %c0_i32 : i32
    %1 = arith.extui %0 : i1 to i32
    %cst = arith.constant -1.000000e+30 : f32
    %c0_i32_0 = arith.constant 0 : i32
    %2 = arith.cmpi ne, %1, %c0_i32_0 : i32
    scf.if %2 {
      %c0_i32_2 = arith.constant 0 : i32
      %6 = arith.cmpi eq, %arg2, %c0_i32_2 : i32
      %7 = arith.extui %6 : i1 to i32
      %c0_i32_3 = arith.constant 0 : i32
      %8 = arith.cmpi ne, %7, %c0_i32_3 : i32
      scf.if %8 {
        %35 = vector.broadcast %cst : f32 to vector<8x128xf32>
        %c0_22 = arith.constant 0 : index
        %c0_23 = arith.constant 0 : index
        %36 = vector.load %arg9[%c0_22, %c0_23] : memref<8x128xf32, #tpu.memory_space<vmem>>, vector<8x128xf32>
        tpu.vector_store %arg9[%c0_22, %c0_23], %35 {strides = array<i32>} : memref<8x128xf32, #tpu.memory_space<vmem>>, vector<8x128xf32>,
        %cst_24 = arith.constant 0.000000e+00 : f32
        %37 = vector.broadcast %cst_24 : f32 to vector<8x128xf32>
        %c0_25 = arith.constant 0 : index
        %c0_26 = arith.constant 0 : index
        %38 = vector.load %arg10[%c0_25, %c0_26] : memref<8x128xf32, #tpu.memory_space<vmem>>, vector<8x128xf32>
        tpu.vector_store %arg10[%c0_25, %c0_26], %37 {strides = array<i32>} : memref<8x128xf32, #tpu.memory_space<vmem>>, vector<8x128xf32>,
        %c0_27 = arith.constant 0 : index
        %c0_28 = arith.constant 0 : index
        %39 = vector.load %arg3[%c0_27, %c0_28] : memref<8x128xf32, #tpu.memory_space<vmem>>, vector<8x128xf32>
        %40 = arith.mulf %39, %39 : vector<8x128xf32>
        %cst_29 = arith.constant dense<0.000000e+00> : vector<8xf32>
        %41 = vector.multi_reduction <add>, %40, %cst_29 [1] : vector<8x128xf32> to vector<8xf32>
        %42 = vector.shape_cast %41 : vector<8xf32> to vector<8x1xf32>
        %cst_30 = arith.constant 1.000000e-24 : f32
        %43 = vector.broadcast %cst_30 : f32 to vector<8x1xf32>
        %44 = arith.maximumf %42, %43 : vector<8x1xf32>
        %45 = math.rsqrt %44 : vector<8x1xf32>
        %46 = vector.broadcast %45 : vector<8x1xf32> to vector<8x128xf32>
        %47 = arith.mulf %39, %46 : vector<8x128xf32>
        %48 = tpu.iota {dimensions = array<i32: 1>} : vector<8x128xi32>
        %c32_i32 = arith.constant 32 : i32
        %49 = vector.broadcast %c32_i32 : i32 to vector<8x128xi32>
        %50 = arith.cmpi eq, %48, %49 : vector<8x128xi32>
        %cst_31 = arith.constant 1.000000e+00 : f32
        %51 = vector.broadcast %cst_31 : f32 to vector<8x128xf32>
        %52 = arith.select %50, %51, %47 : vector<8x128xi1>, vector<8x128xf32>
        %53 = arith.truncf %52 : vector<8x128xf32> to vector<8x128xbf16>
        %c0_32 = arith.constant 0 : index
        %c0_33 = arith.constant 0 : index
        %54 = vector.load %arg11[%c0_32, %c0_33] : memref<8x128xbf16, #tpu.memory_space<vmem>>, vector<8x128xbf16>
        tpu.vector_store %arg11[%c0_32, %c0_33], %53 {strides = array<i32>} : memref<8x128xbf16, #tpu.memory_space<vmem>>, vector<8x128xbf16>,
      } else {
      }
      %c0 = arith.constant 0 : index
      %c0_4 = arith.constant 0 : index
      %9 = vector.load %arg11[%c0, %c0_4] : memref<8x128xbf16, #tpu.memory_space<vmem>>, vector<8x128xbf16>
      %c0_5 = arith.constant 0 : index
      %c0_6 = arith.constant 0 : index
      %10 = vector.load %arg4[%c0_5, %c0_6] : memref<128x128xbf16, #tpu.memory_space<vmem>>, vector<128x128xbf16>
      %cst_7 = arith.constant dense<0.000000e+00> : vector<8x128xf32>
      %11 = tpu.matmul %9, %10, %cst_7 {dimension_numbers = #tpu.dot_dimension_numbers<[1], [0], [0], [1], [0, 0, 1, 1], [], []>} : vector<8x128xbf16>, vector<128x128xbf16>, vector<8x128xf32> -> vector<8x128xf32>
      %12 = arith.index_cast %arg2 : i32 to index
      %c0_8 = arith.constant 0 : index
      %c0_9 = arith.constant 0 : index
      %13 = vector.load %arg8[%12, %c0_8, %c0_9] : memref<2x8x128xf32, #tpu.memory_space<vmem>>, vector<1x8x128xf32>
      %14 = vector.shape_cast %13 : vector<1x8x128xf32> to vector<8x128xf32>
      %15 = vector.shape_cast %11 : vector<8x128xf32> to vector<1x8x128xf32>
      tpu.vector_store %arg8[%12, %c0_8, %c0_9], %15 {strides = array<i32>} : memref<2x8x128xf32, #tpu.memory_space<vmem>>, vector<1x8x128xf32>,
      %c0_10 = arith.constant 0 : index
      %c0_11 = arith.constant 0 : index
      %16 = vector.load %arg9[%c0_10, %c0_11] : memref<8x128xf32, #tpu.memory_space<vmem>>, vector<8x128xf32>
      %17 = tpu.iota {dimensions = array<i32: 1>} : vector<8x128xi32>
      %c8_i32 = arith.constant 8 : i32
      %18 = vector.broadcast %c8_i32 : i32 to vector<8x128xi32>
      %19 = arith.cmpi slt, %17, %18 : vector<8x128xi32>
      %cst_12 = arith.constant 0x7F800000 : f32
      %20 = vector.broadcast %cst_12 : f32 to vector<8x128xf32>
      %21 = arith.select %19, %16, %20 : vector<8x128xi1>, vector<8x128xf32>
      %cst_13 = arith.constant dense<0x7F800000> : vector<8xf32>
      %22 = vector.multi_reduction <minimumf>, %21, %cst_13 [1] : vector<8x128xf32> to vector<8xf32>
      %23 = vector.shape_cast %22 : vector<8xf32> to vector<8x1xf32>
      %cst_14 = arith.constant dense<0xFF800000> : vector<8xf32>
      %24 = vector.multi_reduction <maximumf>, %11, %cst_14 [1] : vector<8x128xf32> to vector<8xf32>
      %25 = vector.shape_cast %24 : vector<8xf32> to vector<8x1xf32>
      %26 = arith.subf %25, %23 : vector<8x1xf32>
      %cst_15 = arith.constant dense<0xFF800000> : vector<1xf32>
      %27 = vector.multi_reduction <maximumf>, %26, %cst_15 [0] : vector<8x1xf32> to vector<1xf32>
      %28 = vector.shape_cast %27 : vector<1xf32> to vector<1x1xf32>
      %c0_16 = arith.constant 0 : index
      %c0_17 = arith.constant 0 : index
      %29 = vector.load %arg12[%c0_16, %c0_17] : memref<1x1xf32, #tpu.memory_space<vmem>>, vector<1x1xf32>
      tpu.vector_store %arg12[%c0_16, %c0_17], %28 {strides = array<i32>} : memref<1x1xf32, #tpu.memory_space<vmem>>, vector<1x1xf32>,
      %c0_18 = arith.constant 0 : index
      %c0_19 = arith.constant 0 : index
      %30 = vector.load %arg12[%c0_18, %c0_19] : memref<1x1xf32, #tpu.memory_space<vmem>>, vector<1x1xf32>
      %31 = vector.extract %30[0, 0] : f32 from vector<1x1xf32>
      %cst_20 = arith.constant 0.000000e+00 : f32
      %32 = arith.cmpf ogt, %31, %cst_20 : f32
      %33 = arith.extui %32 : i1 to i32
      %c0_i32_21 = arith.constant 0 : i32
      %34 = arith.cmpi ne, %33, %c0_i32_21 : i32
      scf.if %34 {
        %c0_i32_22 = arith.constant 0 : i32
        %c8_i32_23 = arith.constant 8 : i32
        %35 = arith.muli %c0_i32_22, %c8_i32_23 : i32
        %36 = tpu.assume_multiple %35, 8 : i32
        %c0_i32_24 = arith.constant 0 : i32
        %c0_i32_25 = arith.constant 0 : i32
        %37 = tpu.memref_slice %arg8[%arg2, %c0_i32_24, %c0_i32_25] : memref<2x8x128xf32, #tpu.memory_space<vmem>> -> memref<1x8x128xf32, #tpu.memory_space<vmem>>
        %38 = tpu.memref_squeeze %37 : memref<1x8x128xf32, #tpu.memory_space<vmem>> -> memref<8x128xf32, #tpu.memory_space<vmem>>
        %39 = arith.index_cast %36 : i32 to index
        %c0_26 = arith.constant 0 : index
        %40 = vector.load %38[%39, %c0_26] : memref<8x128xf32, #tpu.memory_space<vmem>>, vector<8x128xf32>
        %41 = arith.index_cast %36 : i32 to index
        %c0_27 = arith.constant 0 : index
        %42 = vector.load %arg9[%41, %c0_27] : memref<8x128xf32, #tpu.memory_space<vmem>>, vector<8x128xf32>
        %43 = tpu.iota {dimensions = array<i32: 1>} : vector<8x128xi32>
        %44 = vector.broadcast %cst : f32 to vector<8x128xf32>
        %cst_28 = arith.constant dense<0xFF800000> : vector<8xf32>
        %45 = vector.multi_reduction <maximumf>, %40, %cst_28 [1] : vector<8x128xf32> to vector<8xf32>
        %46 = vector.shape_cast %45 : vector<8xf32> to vector<8x1xf32>
        %cst_29 = arith.constant dense<0xFF800000> : vector<8xf32>
        %47 = vector.multi_reduction <maximumf>, %42, %cst_29 [1] : vector<8x128xf32> to vector<8xf32>
        %48 = vector.shape_cast %47 : vector<8xf32> to vector<8x1xf32>
        %49 = arith.maximumf %46, %48 : vector<8x1xf32>
        %c0_i32_30 = arith.constant 0 : i32
        %50 = vector.broadcast %c0_i32_30 : i32 to vector<8x128xi32>
        %51 = arith.cmpi eq, %43, %50 : vector<8x128xi32>
        %52 = vector.shape_cast %49 : vector<8x1xf32> to vector<8x1xf32>
        %53 = vector.broadcast %52 : vector<8x1xf32> to vector<8x128xf32>
        %54 = arith.select %51, %53, %44 : vector<8x128xi1>, vector<8x128xf32>
        %55 = vector.broadcast %49 : vector<8x1xf32> to vector<8x128xf32>
        %56 = arith.cmpf oge, %40, %55 : vector<8x128xf32>
        %57 = vector.broadcast %cst : f32 to vector<8x128xf32>
        %58 = arith.select %56, %57, %40 : vector<8x128xi1>, vector<8x128xf32>
        %59 = vector.broadcast %49 : vector<8x1xf32> to vector<8x128xf32>
        %60 = arith.cmpf oge, %42, %59 : vector<8x128xf32>
        %61 = vector.broadcast %cst : f32 to vector<8x128xf32>
        %62 = arith.select %60, %61, %42 : vector<8x128xi1>, vector<8x128xf32>
        %cst_31 = arith.constant dense<0xFF800000> : vector<8xf32>
        %63 = vector.multi_reduction <maximumf>, %58, %cst_31 [1] : vector<8x128xf32> to vector<8xf32>
        %64 = vector.shape_cast %63 : vector<8xf32> to vector<8x1xf32>
        %cst_32 = arith.constant dense<0xFF800000> : vector<8xf32>
        %65 = vector.multi_reduction <maximumf>, %62, %cst_32 [1] : vector<8x128xf32> to vector<8xf32>
        %66 = vector.shape_cast %65 : vector<8xf32> to vector<8x1xf32>
        %67 = arith.maximumf %64, %66 : vector<8x1xf32>
        %c1_i32_33 = arith.constant 1 : i32
        %68 = vector.broadcast %c1_i32_33 : i32 to vector<8x128xi32>
        %69 = arith.cmpi eq, %43, %68 : vector<8x128xi32>
        %70 = vector.shape_cast %67 : vector<8x1xf32> to vector<8x1xf32>
        %71 = vector.broadcast %70 : vector<8x1xf32> to vector<8x128xf32>
        %72 = arith.select %69, %71, %54 : vector<8x128xi1>, vector<8x128xf32>
        %73 = vector.broadcast %67 : vector<8x1xf32> to vector<8x128xf32>
        %74 = arith.cmpf oge, %58, %73 : vector<8x128xf32>
        %75 = vector.broadcast %cst : f32 to vector<8x128xf32>
        %76 = arith.select %74, %75, %58 : vector<8x128xi1>, vector<8x128xf32>
        %77 = vector.broadcast %67 : vector<8x1xf32> to vector<8x128xf32>
        %78 = arith.cmpf oge, %62, %77 : vector<8x128xf32>
        %79 = vector.broadcast %cst : f32 to vector<8x128xf32>
        %80 = arith.select %78, %79, %62 : vector<8x128xi1>, vector<8x128xf32>
        %cst_34 = arith.constant dense<0xFF800000> : vector<8xf32>
        %81 = vector.multi_reduction <maximumf>, %76, %cst_34 [1] : vector<8x128xf32> to vector<8xf32>
        %82 = vector.shape_cast %81 : vector<8xf32> to vector<8x1xf32>
        %cst_35 = arith.constant dense<0xFF800000> : vector<8xf32>
        %83 = vector.multi_reduction <maximumf>, %80, %cst_35 [1] : vector<8x128xf32> to vector<8xf32>
        %84 = vector.shape_cast %83 : vector<8xf32> to vector<8x1xf32>
        %85 = arith.maximumf %82, %84 : vector<8x1xf32>
        %c2_i32 = arith.constant 2 : i32
        %86 = vector.broadcast %c2_i32 : i32 to vector<8x128xi32>
        %87 = arith.cmpi eq, %43, %86 : vector<8x128xi32>
        %88 = vector.shape_cast %85 : vector<8x1xf32> to vector<8x1xf32>
        %89 = vector.broadcast %88 : vector<8x1xf32> to vector<8x128xf32>
        %90 = arith.select %87, %89, %72 : vector<8x128xi1>, vector<8x128xf32>
        %91 = vector.broadcast %85 : vector<8x1xf32> to vector<8x128xf32>
        %92 = arith.cmpf oge, %76, %91 : vector<8x128xf32>
        %93 = vector.broadcast %cst : f32 to vector<8x128xf32>
        %94 = arith.select %92, %93, %76 : vector<8x128xi1>, vector<8x128xf32>
        %95 = vector.broadcast %85 : vector<8x1xf32> to vector<8x128xf32>
        %96 = arith.cmpf oge, %80, %95 : vector<8x128xf32>
        %97 = vector.broadcast %cst : f32 to vector<8x128xf32>
        %98 = arith.select %96, %97, %80 : vector<8x128xi1>, vector<8x128xf32>
        %cst_36 = arith.constant dense<0xFF800000> : vector<8xf32>
        %99 = vector.multi_reduction <maximumf>, %94, %cst_36 [1] : vector<8x128xf32> to vector<8xf32>
        %100 = vector.shape_cast %99 : vector<8xf32> to vector<8x1xf32>
        %cst_37 = arith.constant dense<0xFF800000> : vector<8xf32>
        %101 = vector.multi_reduction <maximumf>, %98, %cst_37 [1] : vector<8x128xf32> to vector<8xf32>
        %102 = vector.shape_cast %101 : vector<8xf32> to vector<8x1xf32>
        %103 = arith.maximumf %100, %102 : vector<8x1xf32>
        %c3_i32 = arith.constant 3 : i32
        %104 = vector.broadcast %c3_i32 : i32 to vector<8x128xi32>
        %105 = arith.cmpi eq, %43, %104 : vector<8x128xi32>
        %106 = vector.shape_cast %103 : vector<8x1xf32> to vector<8x1xf32>
        %107 = vector.broadcast %106 : vector<8x1xf32> to vector<8x128xf32>
        %108 = arith.select %105, %107, %90 : vector<8x128xi1>, vector<8x128xf32>
        %109 = vector.broadcast %103 : vector<8x1xf32> to vector<8x128xf32>
        %110 = arith.cmpf oge, %94, %109 : vector<8x128xf32>
        %111 = vector.broadcast %cst : f32 to vector<8x128xf32>
        %112 = arith.select %110, %111, %94 : vector<8x128xi1>, vector<8x128xf32>
        %113 = vector.broadcast %103 : vector<8x1xf32> to vector<8x128xf32>
        %114 = arith.cmpf oge, %98, %113 : vector<8x128xf32>
        %115 = vector.broadcast %cst : f32 to vector<8x128xf32>
        %116 = arith.select %114, %115, %98 : vector<8x128xi1>, vector<8x128xf32>
        %cst_38 = arith.constant dense<0xFF800000> : vector<8xf32>
        %117 = vector.multi_reduction <maximumf>, %112, %cst_38 [1] : vector<8x128xf32> to vector<8xf32>
        %118 = vector.shape_cast %117 : vector<8xf32> to vector<8x1xf32>
        %cst_39 = arith.constant dense<0xFF800000> : vector<8xf32>
        %119 = vector.multi_reduction <maximumf>, %116, %cst_39 [1] : vector<8x128xf32> to vector<8xf32>
        %120 = vector.shape_cast %119 : vector<8xf32> to vector<8x1xf32>
        %121 = arith.maximumf %118, %120 : vector<8x1xf32>
        %c4_i32 = arith.constant 4 : i32
        %122 = vector.broadcast %c4_i32 : i32 to vector<8x128xi32>
        %123 = arith.cmpi eq, %43, %122 : vector<8x128xi32>
        %124 = vector.shape_cast %121 : vector<8x1xf32> to vector<8x1xf32>
        %125 = vector.broadcast %124 : vector<8x1xf32> to vector<8x128xf32>
        %126 = arith.select %123, %125, %108 : vector<8x128xi1>, vector<8x128xf32>
        %127 = vector.broadcast %121 : vector<8x1xf32> to vector<8x128xf32>
        %128 = arith.cmpf oge, %112, %127 : vector<8x128xf32>
        %129 = vector.broadcast %cst : f32 to vector<8x128xf32>
        %130 = arith.select %128, %129, %112 : vector<8x128xi1>, vector<8x128xf32>
        %131 = vector.broadcast %121 : vector<8x1xf32> to vector<8x128xf32>
        %132 = arith.cmpf oge, %116, %131 : vector<8x128xf32>
        %133 = vector.broadcast %cst : f32 to vector<8x128xf32>
        %134 = arith.select %132, %133, %116 : vector<8x128xi1>, vector<8x128xf32>
        %cst_40 = arith.constant dense<0xFF800000> : vector<8xf32>
        %135 = vector.multi_reduction <maximumf>, %130, %cst_40 [1] : vector<8x128xf32> to vector<8xf32>
        %136 = vector.shape_cast %135 : vector<8xf32> to vector<8x1xf32>
        %cst_41 = arith.constant dense<0xFF800000> : vector<8xf32>
        %137 = vector.multi_reduction <maximumf>, %134, %cst_41 [1] : vector<8x128xf32> to vector<8xf32>
        %138 = vector.shape_cast %137 : vector<8xf32> to vector<8x1xf32>
        %139 = arith.maximumf %136, %138 : vector<8x1xf32>
        %c5_i32 = arith.constant 5 : i32
        %140 = vector.broadcast %c5_i32 : i32 to vector<8x128xi32>
        %141 = arith.cmpi eq, %43, %140 : vector<8x128xi32>
        %142 = vector.shape_cast %139 : vector<8x1xf32> to vector<8x1xf32>
        %143 = vector.broadcast %142 : vector<8x1xf32> to vector<8x128xf32>
        %144 = arith.select %141, %143, %126 : vector<8x128xi1>, vector<8x128xf32>
        %145 = vector.broadcast %139 : vector<8x1xf32> to vector<8x128xf32>
        %146 = arith.cmpf oge, %130, %145 : vector<8x128xf32>
        %147 = vector.broadcast %cst : f32 to vector<8x128xf32>
        %148 = arith.select %146, %147, %130 : vector<8x128xi1>, vector<8x128xf32>
        %149 = vector.broadcast %139 : vector<8x1xf32> to vector<8x128xf32>
        %150 = arith.cmpf oge, %134, %149 : vector<8x128xf32>
        %151 = vector.broadcast %cst : f32 to vector<8x128xf32>
        %152 = arith.select %150, %151, %134 : vector<8x128xi1>, vector<8x128xf32>
        %cst_42 = arith.constant dense<0xFF800000> : vector<8xf32>
        %153 = vector.multi_reduction <maximumf>, %148, %cst_42 [1] : vector<8x128xf32> to vector<8xf32>
        %154 = vector.shape_cast %153 : vector<8xf32> to vector<8x1xf32>
        %cst_43 = arith.constant dense<0xFF800000> : vector<8xf32>
        %155 = vector.multi_reduction <maximumf>, %152, %cst_43 [1] : vector<8x128xf32> to vector<8xf32>
        %156 = vector.shape_cast %155 : vector<8xf32> to vector<8x1xf32>
        %157 = arith.maximumf %154, %156 : vector<8x1xf32>
        %c6_i32 = arith.constant 6 : i32
        %158 = vector.broadcast %c6_i32 : i32 to vector<8x128xi32>
        %159 = arith.cmpi eq, %43, %158 : vector<8x128xi32>
        %160 = vector.shape_cast %157 : vector<8x1xf32> to vector<8x1xf32>
        %161 = vector.broadcast %160 : vector<8x1xf32> to vector<8x128xf32>
        %162 = arith.select %159, %161, %144 : vector<8x128xi1>, vector<8x128xf32>
        %163 = vector.broadcast %157 : vector<8x1xf32> to vector<8x128xf32>
        %164 = arith.cmpf oge, %148, %163 : vector<8x128xf32>
        %165 = vector.broadcast %cst : f32 to vector<8x128xf32>
        %166 = arith.select %164, %165, %148 : vector<8x128xi1>, vector<8x128xf32>
        %167 = vector.broadcast %157 : vector<8x1xf32> to vector<8x128xf32>
        %168 = arith.cmpf oge, %152, %167 : vector<8x128xf32>
        %169 = vector.broadcast %cst : f32 to vector<8x128xf32>
        %170 = arith.select %168, %169, %152 : vector<8x128xi1>, vector<8x128xf32>
        %cst_44 = arith.constant dense<0xFF800000> : vector<8xf32>
        %171 = vector.multi_reduction <maximumf>, %166, %cst_44 [1] : vector<8x128xf32> to vector<8xf32>
        %172 = vector.shape_cast %171 : vector<8xf32> to vector<8x1xf32>
        %cst_45 = arith.constant dense<0xFF800000> : vector<8xf32>
        %173 = vector.multi_reduction <maximumf>, %170, %cst_45 [1] : vector<8x128xf32> to vector<8xf32>
        %174 = vector.shape_cast %173 : vector<8xf32> to vector<8x1xf32>
        %175 = arith.maximumf %172, %174 : vector<8x1xf32>
        %c7_i32 = arith.constant 7 : i32
        %176 = vector.broadcast %c7_i32 : i32 to vector<8x128xi32>
        %177 = arith.cmpi eq, %43, %176 : vector<8x128xi32>
        %178 = vector.shape_cast %175 : vector<8x1xf32> to vector<8x1xf32>
        %179 = vector.broadcast %178 : vector<8x1xf32> to vector<8x128xf32>
        %180 = arith.select %177, %179, %162 : vector<8x128xi1>, vector<8x128xf32>
        %181 = arith.index_cast %36 : i32 to index
        %c0_46 = arith.constant 0 : index
        %182 = vector.load %arg9[%181, %c0_46] : memref<8x128xf32, #tpu.memory_space<vmem>>, vector<8x128xf32>
        tpu.vector_store %arg9[%181, %c0_46], %180 {strides = array<i32>} : memref<8x128xf32, #tpu.memory_space<vmem>>, vector<8x128xf32>,
        %c1_i32_47 = arith.constant 1 : i32
      } else {
      }
    } else {
    }
    %c1_i32 = arith.constant 1 : i32
    %3 = arith.cmpi eq, %arg1, %c1_i32 : i32
    %4 = arith.extui %3 : i1 to i32
    %c0_i32_1 = arith.constant 0 : i32
    %5 = arith.cmpi ne, %4, %c0_i32_1 : i32
    scf.if %5 {
      %c0 = arith.constant 0 : index
      %c0_2 = arith.constant 0 : index
      %6 = vector.load %arg9[%c0, %c0_2] : memref<8x128xf32, #tpu.memory_space<vmem>>, vector<8x128xf32>
      %cst_3 = arith.constant dense<0xFF800000> : vector<8xf32>
      %7 = vector.multi_reduction <maximumf>, %6, %cst_3 [1] : vector<8x128xf32> to vector<8xf32>
      %8 = vector.shape_cast %7 : vector<8xf32> to vector<8x1xf32>
      %9 = tpu.iota {dimensions = array<i32: 1>} : vector<8x128xi32>
      %c8_i32 = arith.constant 8 : i32
      %10 = vector.broadcast %c8_i32 : i32 to vector<8x128xi32>
      %11 = arith.cmpi slt, %9, %10 : vector<8x128xi32>
      %cst_4 = arith.constant 0x7F800000 : f32
      %12 = vector.broadcast %cst_4 : f32 to vector<8x128xf32>
      %13 = arith.select %11, %6, %12 : vector<8x128xi1>, vector<8x128xf32>
      %cst_5 = arith.constant dense<0x7F800000> : vector<8xf32>
      %14 = vector.multi_reduction <minimumf>, %13, %cst_5 [1] : vector<8x128xf32> to vector<8xf32>
      %15 = vector.shape_cast %14 : vector<8xf32> to vector<8x1xf32>
      %16 = arith.index_cast %arg2 : i32 to index
      %c0_6 = arith.constant 0 : index
      %c0_7 = arith.constant 0 : index
      %17 = vector.load %arg8[%16, %c0_6, %c0_7] : memref<2x8x128xf32, #tpu.memory_space<vmem>>, vector<1x8x128xf32>
      %18 = vector.shape_cast %17 : vector<1x8x128xf32> to vector<8x128xf32>
      %19 = vector.broadcast %15 : vector<8x1xf32> to vector<8x128xf32>
      %20 = arith.cmpf oge, %18, %19 : vector<8x128xf32>
      %21 = vector.broadcast %8 : vector<8x1xf32> to vector<8x128xf32>
      %22 = arith.subf %18, %21 : vector<8x128xf32>
      %cst_8 = arith.constant 1.000000e+01 : f32
      %23 = vector.broadcast %cst_8 : f32 to vector<8x128xf32>
      %24 = arith.mulf %22, %23 : vector<8x128xf32>
      %25 = math.exp %24 : vector<8x128xf32>
      %cst_9 = arith.constant 0.000000e+00 : f32
      %26 = vector.broadcast %cst_9 : f32 to vector<8x128xf32>
      %27 = arith.select %20, %25, %26 : vector<8x128xi1>, vector<8x128xf32>
      %c0_10 = arith.constant 0 : index
      %c0_11 = arith.constant 0 : index
      %28 = vector.load %arg10[%c0_10, %c0_11] : memref<8x128xf32, #tpu.memory_space<vmem>>, vector<8x128xf32>
      %29 = arith.truncf %27 : vector<8x128xf32> to vector<8x128xbf16>
      %c0_12 = arith.constant 0 : index
      %c0_13 = arith.constant 0 : index
      %30 = vector.load %arg5[%c0_12, %c0_13] : memref<128x128xbf16, #tpu.memory_space<vmem>>, vector<128x128xbf16>
      %cst_14 = arith.constant dense<0.000000e+00> : vector<8x128xf32>
      %31 = tpu.matmul %29, %30, %cst_14 {dimension_numbers = #tpu.dot_dimension_numbers<[1], [0], [0], [1], [0, 0, 1, 1], [], []>} : vector<8x128xbf16>, vector<128x128xbf16>, vector<8x128xf32> -> vector<8x128xf32>
      %32 = arith.addf %28, %31 : vector<8x128xf32>
      %c0_15 = arith.constant 0 : index
      %c0_16 = arith.constant 0 : index
      %33 = vector.load %arg10[%c0_15, %c0_16] : memref<8x128xf32, #tpu.memory_space<vmem>>, vector<8x128xf32>
      tpu.vector_store %arg10[%c0_15, %c0_16], %32 {strides = array<i32>} : memref<8x128xf32, #tpu.memory_space<vmem>>, vector<8x128xf32>,
      %c1_i32_17 = arith.constant 1 : i32
      %34 = arith.cmpi eq, %arg2, %c1_i32_17 : i32
      %35 = arith.extui %34 : i1 to i32
      %c0_i32_18 = arith.constant 0 : i32
      %36 = arith.cmpi ne, %35, %c0_i32_18 : i32
      scf.if %36 {
        %c0_19 = arith.constant 0 : index
        %c0_20 = arith.constant 0 : index
        %37 = vector.load %arg10[%c0_19, %c0_20] : memref<8x128xf32, #tpu.memory_space<vmem>>, vector<8x128xf32>
        %38 = arith.mulf %37, %37 : vector<8x128xf32>
        %cst_21 = arith.constant dense<0.000000e+00> : vector<8xf32>
        %39 = vector.multi_reduction <add>, %38, %cst_21 [1] : vector<8x128xf32> to vector<8xf32>
        %40 = vector.shape_cast %39 : vector<8xf32> to vector<8x1xf32>
        %cst_22 = arith.constant 1.000000e-24 : f32
        %41 = vector.broadcast %cst_22 : f32 to vector<8x1xf32>
        %42 = arith.maximumf %40, %41 : vector<8x1xf32>
        %43 = math.rsqrt %42 : vector<8x1xf32>
        %44 = vector.broadcast %43 : vector<8x1xf32> to vector<8x128xf32>
        %45 = arith.mulf %37, %44 : vector<8x128xf32>
        %46 = arith.truncf %45 : vector<8x128xf32> to vector<8x128xbf16>
        %c0_23 = arith.constant 0 : index
        %c0_24 = arith.constant 0 : index
        %47 = vector.load %arg6[%c0_23, %c0_24] : memref<128x128xbf16, #tpu.memory_space<vmem>>, vector<128x128xbf16>
        %cst_25 = arith.constant dense<0.000000e+00> : vector<8x128xf32>
        %48 = tpu.matmul %46, %47, %cst_25 {dimension_numbers = #tpu.dot_dimension_numbers<[1], [0], [0], [1], [0, 0, 1, 1], [], []>} : vector<8x128xbf16>, vector<128x128xbf16>, vector<8x128xf32> -> vector<8x128xf32>
        %c0_26 = arith.constant 0 : index
        %c0_27 = arith.constant 0 : index
        %49 = vector.load %arg7[%c0_26, %c0_27] : memref<8x128xf32, #tpu.memory_space<vmem>>, vector<8x128xf32>
        tpu.vector_store %arg7[%c0_26, %c0_27], %48 {strides = array<i32>} : memref<8x128xf32, #tpu.memory_space<vmem>>, vector<8x128xf32>,
      } else {
      }
    } else {
    }
    return
  }
  func.func @transform_0(%arg0: i32, %arg1: i32, %arg2: i32) -> (i32, i32) {
    %c0_i32 = arith.constant 0 : i32
    %c0_i32_0 = arith.constant 0 : i32
    return %arg0, %c0_i32 : i32, i32
  }
  func.func @transform_1(%arg0: i32, %arg1: i32, %arg2: i32) -> (i32, i32) {
    %c1_i32 = arith.constant 1 : i32
    %0 = arith.subi %c1_i32, %arg1 : i32
    %1 = arith.muli %arg2, %0 : i32
    %c1_i32_0 = arith.constant 1 : i32
    %2 = arith.muli %c1_i32_0, %arg1 : i32
    %3 = arith.addi %1, %2 : i32
    %c0_i32 = arith.constant 0 : i32
    %c0_i32_1 = arith.constant 0 : i32
    return %c0_i32, %3 : i32, i32
  }
  func.func @transform_2(%arg0: i32, %arg1: i32, %arg2: i32) -> (i32, i32) {
    %0 = arith.muli %arg2, %arg1 : i32
    %c0_i32 = arith.constant 0 : i32
    %c0_i32_0 = arith.constant 0 : i32
    return %0, %c0_i32 : i32, i32
  }
  func.func @transform_3(%arg0: i32, %arg1: i32, %arg2: i32) -> (i32, i32) {
    %c0_i32 = arith.constant 0 : i32
    %c0_i32_0 = arith.constant 0 : i32
    %c0_i32_1 = arith.constant 0 : i32
    return %c0_i32, %c0_i32_0 : i32, i32
  }
  func.func @transform_4(%arg0: i32, %arg1: i32, %arg2: i32) -> (i32, i32) {
    %c0_i32 = arith.constant 0 : i32
    %c0_i32_0 = arith.constant 0 : i32
    return %arg0, %c0_i32 : i32, i32
  }
}

</mosaic_0001>

<bundles_post_ra>
// kernel: tpu_custom_call.1
= control target key start
LH: loop header
LB: loop body
LE: loop exit
PB: predicated region body
PF: predicated region fallthrough
CT: control target
= control target key end

     0   :  { %s1819_s0 = inlined_call_operand.hbm [shape: f32[8,128], index: 0, kind: input, shape index: {}]   ;;  %s1820_s1 = inlined_call_operand.hbm [shape: bf16[128,256], index: 1, kind: input, shape index: {}]   ;;  %s1821_s2 = inlined_call_operand.hbm [shape: bf16[256,128], index: 2, kind: input, shape index: {}]   ;;  %s1822_s3 = inlined_call_operand.hbm [shape: bf16[128,128], index: 3, kind: input, shape index: {}]   ;;  %s1823_s4 = inlined_call_operand.hbm [shape: f32[8,128], index: 4, kind: output, shape index: {}]  }
   0x1   :  { %1833 = sst [smem:[#allocation25_spill]] %s1819_s0 }
   0x2   :  { %1834 = sst [smem:[#allocation26_spill]] %s1820_s1 }
   0x3   :  { %1835 = sst [smem:[#allocation27_spill]] %s1821_s2 }
   0x4   :  { %1836 = sst [smem:[#allocation28_spill]] %s1823_s4 }
   0x5   :  { %9 = vsyncpa [#allocation8], 0 }
   0x6   :  { %10 = vsyncpa [#allocation11], 0 }
   0x7   :  { %12 = vsyncpa [#allocation11 + $0x1], 0 }
   0x8   :  { %13 = vsyncpa [#allocation14], 0 }
   0x9   :  { %14 = vsyncpa [#allocation9], 0  ;;  %s1523_s15 = smov 0   ;;  %s1525_s16 = smov 0  }
   0xa   :  { %s1527_s17 = smov 0   ;;  %s1529_s18 = smov 0  }
   0xb   :  { %s1531_s19 = smov 0   ;;  %s1533_s20 = smov 0  }
   0xc   :  { %s1535_s21 = smov 0   ;;  %s1537_s22 = smov 0  }
   0xd   :  { %s1539_s23 = smov 0   ;;  %s1541_s24 = smov 0  }
   0xe   :  { %s1543_s25 = smov 0  }
   0xf LB: > { %1837 = sst [smem:[#allocation21_spill]] %s1464_s21  ;;  %s32_s26 = sadd.s32 1, %s1472_s23  ;;  %s1480_s25 = sphi %s1543_s25, %s20_s25   ;;  %s1476_s24 = sphi %s1541_s24, %s1875_s24   ;;  %s1472_s23 = sphi %s1539_s23, %s1874_s23   ;;  %s1468_s22 = sphi %s1537_s22, %s1867_s22   ;;  %s1464_s21 = sphi %s1535_s21, %s1866_s21   ;;  %s1460_s20 = sphi %s1533_s20, %s1873_s20   ;;  %s1456_s19 = sphi %s1531_s19, %s1872_s19   ;;  %s1452_s18 = sphi %s1529_s18, %s1871_s18   ;;  %s1448_s17 = sphi %s1527_s17, %s1870_s17   ;;  %s1444_s16 = sphi %s1525_s16, %s1869_s16   ;;  %s1440_s15 = sphi %s1523_s15, %s1868_s15  }
  0x10   : > { %1838 = sst [smem:[#allocation22_spill]] %s1468_s22  ;;  %s35_s27 = sadd.s32 1, %s1476_s24 }
  0x11   : > { %1839 = sst [smem:[#allocation23_spill]] %s1472_s23  ;;  %p33_p0 = scmp.ge.s32.totalorder %s32_s26, 2 }
  0x12   : > { %1840 = sst [smem:[#allocation24_spill]] %s1476_s24  ;;  %s69_s28 = ssub.s32 1, %s1476_s24 }
  0x13   : > { %s70_s29 = smul.u32 %s1472_s23, %s69_s28  ;;  %s78_s30 = sadd.s32 1, %s1460_s20 }
  0x14   : > { %s1877_s26 = smov (%p33_p0, %s32_s26), 0  ;;  %s1879_s27 = smov (!%p33_p0, %s35_s27), %s1476_s24 }
  0x15   : > { %s71_s5 = sadd.s32 %s1476_s24, %s70_s29  ;;  %p85_p1 = scmp.ne.s32.totalorder %s1460_s20, %s1456_s19 }
  0x16   : > { %p37_p2 = scmp.ge.s32.totalorder %s1879_s27, 2  ;;  %p1827_p3 = scmp.eq.s32.totalorder %s1480_s25, 0 }
  0x17   : > { %p1825_p5 = scmp.lt.s32.totalorder %s1480_s25, 4  ;;  %s216_s9 = sand.u32 1, %s1480_s25  }
  0x18   : > { %s1881_s27 = smov (%p37_p2, %s1879_s27), 0  ;;  %p1594_p4 = por %p1827_p3, %p85_p1 }
  0x19   : > { %s72_s7 = ssub.s32 1, %s1881_s27  ;;  %s218_s10 = sand.u32 1, %s1460_s20  }
  0x1a   : > { %s73_s8 = smul.u32 %s72_s7, %s1877_s26  ;;  %s936_s12 = sshll.u32 %s218_s10, 6 }
  0x1b   : > { %s937_s14 = sshll.u32 %s71_s5, 6  ;;  %s1842_s1 = sld [smem:[#allocation26_spill]] }
  0x1c   : > { %s74_s11 = sadd.s32 %s73_s8, %s1881_s27  ;;  %s220_s21 = scalar_lea.vmem [#allocation10], %s936_s12 }
  0x1d   : > { %s75_s13 = ssub.s32 %s71_s5, %s74_s11  ;;  %s229_s22 = sshll.u32 %s220_s21, 4  ;;  %s230_s22 = int_to_ptr.vmem [resolvable:$true] %s229_s22 }
  0x1e   : > { %p76_p6 = scmp.eq.s32.totalorder %s75_s13, 0  ;;  %p1614_p7 = pnand %p1825_p5, %p1594_p4 }
  0x1f   : > { %s1618_s8 = scalar_lea.sflag [#allocation11], %s216_s9  ;;  %s1255_s5 = scalar_lea.vmem %s230_s22, 1024 }
  0x20   : > { %s1608_s2 = scalar_select %p76_p6, %s1460_s20, %s78_s30  }
  0x21   : > { %s228_s4 = scalar_lea.hbm %s1842_s1, %s937_s14  ;;  %p1244_p8 = pneg %p1614_p7 }
  0x22   : > { %p1256_p9 = scmp.ne.s32.totalorder %s230_s22, %s1255_s5  ;;  %s1482_s10 = smov [#allocation10]  }
  0x23   : > { %s1260_s21 = sshll.u32 %s1482_s10, 4  ;;  %s1261_s21 = int_to_ptr.vmem [resolvable:$false] %s1260_s21 }
  0x24   : > { %p1258_p10 = pnand %p1256_p9, %p1244_p8  ;;  %s1262_s30 = scalar_lea.vmem %s1261_s21, 2048 }
  0x25   : > { %p1263_p12 = scmp.lt.s32.totalorder %s230_s22, %s1261_s21  ;;  %p1264_p13 = scmp.lt.s32.totalorder %s1262_s30, %s1255_s5 }
  0x26   : > { %p1259_p11 = pneg %p1258_p10 }
  0x27   : > { %p1265_p0 = por %p1264_p13, %p1263_p12 }
  0x29   : > { %p1266_p1 = pnand %p1265_p0, %p1259_p11 }
  0x2b   : > { %1269 = shalt.err (!%p1266_p1)
}
  0x2c   : > { %s1483_s6 = smov 128   ;;  %s1484_s9 = smov 64  }
  0x2d   : > { %s1485_s11 = smov 4   ;;  %s1628_s12 = sadd.s32 4294967295, %s1480_s25  }
  0x2e   : > { %1099 = dma.hbm_to_vmem [thread:$0]  (!%p1614_p7), %s228_s4, 1024, %s230_s22, %s1618_s8, %s1483_s6, %s1484_s9, %s1485_s11  }
  0x2f   : > { %p91_p2 = scmp.ne.s32.totalorder %s1456_s19, %s1452_s18  ;;  %p1826_p4 = scmp.eq.s32.totalorder %s1628_s12, 0 }
  0x30   : > { %p119_p6 = scmp.ne.s32.totalorder %s1444_s16, %s1440_s15  ;;  %p932_p8 = scmp.ge.s32.totalorder %s1480_s25, 1 }
  0x31   : > { %p177_p9 = scmp.lt.s32.totalorder %s1480_s25, 5  ;;  %p1639_p10 = por %p1826_p4, %p91_p2 }
  0x32   : > { %p1645_p7 = por %p119_p6, %p1826_p4  ;;  %s1486_s15 = smov [#allocation7]  }
  0x33   : > { %s1844_s13 = scalar_select %p1639_p10, 1, 0 }
  0x34   : > { %s1845_s4 = scalar_select %p1645_p7, 1, 0 }
  0x35   : > { %p1649_p11 = pnand %p932_p8, %p177_p9  ;;  %s192_s18 = sshll.u32 %s1486_s15, 4  ;;  %s193_s18 = int_to_ptr.vmem [resolvable:$true] %s192_s18 }
  0x36   : > { %s1487_s14 = smov [#allocation13]   ;;  %s1663_s7 = smul.u32 %s1472_s23, %s1476_s24 }
  0x37   : > { %s1846_s22 = scalar_select %p1649_p11, 1, 0 }
  0x38   : > { %p1089_p12 = pneg %p1649_p11  ;;  %s202_s28 = sshll.u32 %s1487_s14, 4  ;;  %s203_s28 = int_to_ptr.vmem [resolvable:$true] %s202_s28 }
  0x39   : > { %s1281_s5 = scalar_lea.vmem %s193_s18, 128  ;;  %p1289_p8 = scmp.lt.s32.totalorder %s193_s18, %s193_s18 }
  0x3a   : > { %p1657_p13 = pnand %p1089_p12, %p1826_p4  ;;  %p1282_p1 = scmp.ne.s32.totalorder %s193_s18, %s1281_s5 }
  0x3b   : > { %p1290_p9 = scmp.lt.s32.totalorder %s1281_s5, %s1281_s5 }
  0x3c   : > { %p1272_p0 = pneg %p1657_p13 }
  0x3d   : > { %p1291_p5 = por %p1290_p9, %p1289_p8 }
  0x3e   : > { %p1284_p2 = pnand %p1282_p1, %p1272_p0 }
  0x40   : > { %p1285_p6 = pneg %p1284_p2 }
  0x42   : > { %p1292_p12 = pnand %p1291_p5, %p1285_p6 }
  0x44   : > { %1295 = shalt.err (!%p1292_p12)
}
  0x45   : > { %s1848_s0 = sld [smem:[#allocation25_spill]]  ;;  %s1307_s30 = scalar_lea.vmem %s203_s28, 1024 }
  0x46   : > { %p1308_p4 = scmp.ne.s32.totalorder %s203_s28, %s1307_s30  ;;  %p1315_p1 = scmp.lt.s32.totalorder %s203_s28, %s203_s28 }
  0x47   : > { %p1316_p2 = scmp.lt.s32.totalorder %s1307_s30, %s1307_s30 }
  0x48   : > { %p1310_p3 = pnand %p1308_p4, %p1272_p0 }
  0x49   : > { %p1317_p10 = por %p1316_p2, %p1315_p1 }
  0x4a   : > { %p1311_p7 = pneg %p1310_p3 }
  0x4b   : > { %1092 = dma.hbm_to_vmem [thread:$0]  (!%p1657_p13), %s1848_s0, 128, %s193_s18, [#allocation8]  }
  0x4c   : > { %p1318_p11 = pnand %p1317_p10, %p1311_p7 }
  0x4e   : > { %1321 = shalt.err (!%p1318_p11)
}
  0x4f   : > { %1095 = dma.hbm_to_vmem [thread:$0]  (!%p1657_p13), %s1822_s3, 1024, %s203_s28, [#allocation14], %s1484_s9, %s1484_s9, %s1485_s11  }
  0x50   : > { %s102_s18 = smul.u32 %s1881_s27, %s1877_s26  ;;  %s106_s14 = sadd.s32 1, %s1448_s17 }
  0x51   : > { %p113_p3 = scmp.ne.s32.totalorder %s1448_s17, %s1444_s16  ;;  %s241_s29 = sand.u32 1, %s1448_s17  }
  0x52   : > { %s103_s5 = ssub.s32 %s1663_s7, %s102_s18  ;;  %s938_s10 = sshll.u32 %s241_s29, 6 }
  0x53   : > { %p104_p5 = scmp.eq.s32.totalorder %s103_s5, 0  ;;  %p1849_p4 = scmp.eq.s32.totalorder %s1480_s25, 0 }
  0x54   : > { %s983_s21 = sshll.u32 %s1663_s7, 10  ;;  %s1850_s0 = sld [smem:[#allocation27_spill]] }
  0x55   : > { %p115_p10 = por %p113_p3, %p1849_p4  ;;  %s243_s24 = scalar_lea.vmem [#allocation12], %s938_s10 }
  0x56   : > { %s1697_s30 = scalar_select %p104_p5, %s1448_s17, %s106_s14  }
  0x57   : > { %s251_s23 = sshll.u32 %s243_s24, 4  ;;  %p1851_p7 = scmp.lt.s32.totalorder %s1480_s25, 4  ;;  %s252_s23 = int_to_ptr.vmem [resolvable:$true] %s251_s23 }
  0x58   : > { %s1335_s18 = scalar_lea.vmem %s252_s23, 1024  ;;  %s1488_s7 = smov [#allocation12]  }
  0x59   : > { %p1704_p11 = pnand %p1851_p7, %p115_p10  ;;  %p1336_p0 = scmp.ne.s32.totalorder %s252_s23, %s1335_s18 }
  0x5a   : > { %s250_s1 = scalar_lea.hbm %s1850_s0, %s983_s21  ;;  %s1340_s14 = sshll.u32 %s1488_s7, 4  ;;  %s1341_s14 = int_to_ptr.vmem [resolvable:$false] %s1340_s14 }
  0x5b   : > { %p1324_p13 = pneg %p1704_p11  ;;  %s1342_s29 = scalar_lea.vmem %s1341_s14, 2048 }
  0x5c   : > { %p1343_p9 = scmp.lt.s32.totalorder %s252_s23, %s1341_s14  ;;  %p1344_p12 = scmp.lt.s32.totalorder %s1342_s29, %s1335_s18 }
  0x5d   : > { %p1338_p6 = pnand %p1336_p0, %p1324_p13 }
  0x5e   : > { %p1345_p1 = por %p1344_p12, %p1343_p9 }
  0x5f   : > { %p1339_p8 = pneg %p1338_p6 }
  0x61   : > { %p1346_p2 = pnand %p1345_p1, %p1339_p8 }
  0x63   : > { %1349 = shalt.err (!%p1346_p2)
}
  0x64   : > { %1102 = dma.hbm_to_vmem [thread:$0]  (!%p1704_p11), %s250_s1, 1024, %s252_s23, %s1618_s8, %s1484_s9, %s1484_s9, %s1485_s11  }
  0x65   : > { %p1853_p3 = scmp.ne.s32.totalorder %s1846_s22, 0 }
  0x66   : > { %p1854_p5 = scmp.eq.s32.totalorder (!%p1853_p3), %s1628_s12, 0 }
  0x67   : > { %263 = sbr.rel (%p1853_p3) target bundleno = 2643 (0xa53), region = 36 }
  0x6c   : > { %1419 = dma.done.wait (%p1854_p5), [#allocation8], 128   ;;  %p1855_p4 = pmov %p1854_p5 }
  0x6d   : > { %s269_s0 = sand.u32 1, %s1628_s12   ;;  %s271_s24 = sand.u32 1, %s1456_s19  }
  0x6e   : > { %1421 = vsyncadd (%p1855_p4), [#allocation8], 4294967168  ;;  %s943_s5 = sshll.u32 %s271_s24, 6  ;;  %s270_s10 = scalar_lea.sflag [#allocation11], %s269_s0 }
  0x6f   : > { %s1724_s21 = scalar_lea.vmem [#allocation10], %s943_s5  ;;  %p1856_p10 = scmp.ne.s32.totalorder %s1844_s13, 0 }
  0x71   : > { %1423 = dma.done.wait (%p1856_p10), %s270_s10, 1024  }
  0x72   : > { %1425 = vsyncadd (%p1856_p10), %s270_s10, 4294966272  ;;  %s280_s1 = sand.u32 1, %s1444_s16   ;;  %p1857_p7 = scmp.ne.s32.totalorder %s1845_s4, 0 }
  0x73   : > { %s944_s23 = sshll.u32 %s280_s1, 6 }
  0x74   : > { %s1731_s8 = scalar_lea.vmem [#allocation12], %s944_s23 }
  0x75   : > { %1427 = dma.done.wait (%p1857_p7), %s270_s10, 1024  }
  0x76   : > { %1429 = vsyncadd (%p1857_p7), %s270_s10, 4294966272  ;;  %p1858_p11 = pmov %p1855_p4 }
  0x77   : > { %p1859_p13 = pmov %p1855_p4 }
  0x78   : > { %1431 = dma.done.wait (%p1858_p11), [#allocation14], 1024  }
  0x79   : > { %1433 = vsyncadd (%p1859_p13), [#allocation14], 4294966272  ;;  %s1860_s9 = sld [smem:[#allocation22_spill]] }
  0x7f   : > { %p946_p0 = scmp.ne.s32.totalorder %s1860_s9, 0 }
  0x80   : > { %s1861_s11 = sld [smem:[#allocation21_spill]] (!%p946_p0) }
  0x81   : > { %320 = sbr.rel (%p946_p0) target bundleno = 1886 (0x75e), region = 56 }
  0x86   : > { %p947_p6 = scmp.ne.s32.totalorder %s1861_s11, 0 }
  0x88   : > { %324 = sbr.rel (%p947_p6) target bundleno = 304 (0x130), region = 60 }
  0x8d   : > { %v327_v0 = vld [vmem:[#allocation7] sm:$0xff]  ;;  %v1489_v1 = vmov -1e+30   ;;  %v1490_v2 = vmov 0.0   ;;  %v334_v6 = vlaneseq }
  0x8e   : > { %325 = vst [vmem:[#allocation3] sm:$0xff] %v1489_v1  ;;  %326 = vst [vmem:[#allocation4] sm:$0xff] %v1490_v2  ;;  %v328_v3 = vmul.f32 %v327_v0, %v327_v0 }
  0x8f   : > { %v335_v7 = vand.u32 127, %v334_v6 }
  0x90   : > { %329 = vadd.xlane.f32.xlu0 %v328_v3 }
  0x91   : > { %vm336_vm0 = vcmp.eq.s32.totalorder %v335_v7, 32 }
 0x119   : > { %v330_v4 = vpop.xlane.xlu0 %329 }
 0x11a   : > { %v331_v5 = vmax.f32 %v330_v4, 1e-24 }
 0x11c   : > { %1212 = vrsqrt.f32 %v331_v5 }
 0x129   : > { %v1213_v8 = vpop.eup %1212 }
 0x12a   : > { %v333_v9 = vmul.f32 %v1213_v8, %v327_v0 }
 0x12c   : > { %v337_v10 = vsel %vm336_vm0, 1.0, %v333_v9 }
 0x12d   : > { %v338_v11 = vpack.c.bf16 %v337_v10, %v337_v10 }
 0x12f   : > { %339 = vst [vmem:[#allocation5] sm:$0xf] %v338_v11 }
 0x130 PF: > { %v1214_v12 = vld [vmem:[%s1724_s21 + $0x38] sm:$0xff]   ;;  %v449_v13 = vlaneseq  ;;  %v1491_v14 = vmov 0.0   ;;  %v1215_v15 = vld [vmem:[%s1724_s21 + $0x30] sm:$0xff]   ;;  %vm1492_vm1 = vmmov 0   ;;  %v1216_v17 = vld [vmem:[%s1724_s21 + $0x28] sm:$0xff]   ;;  %s1862_s13 = sld [smem:[#allocation21_spill]] }
 0x131   : > { %1011 = vmatprep.subr.bf16.mxu0 %v1491_v14  ;;  %1027 = vmatprep.mubr.msk.bf16.mxu0 %vm1492_vm1, %v1491_v14  ;;  %v448_v18 = vld [vmem:[#allocation3] sm:$0xff]  ;;  %v1218_v21 = vld [vmem:[%s1724_s21 + $0x18] sm:$0xff]   ;;  %v1219_v22 = vld [vmem:[%s1724_s21 + $0x10] sm:$0xff]   ;;  %vm464_vm3 = vcmask 0  }
 0x132   : > { %1012 = vmatpush3.bf16.msra.mxu0 %v1214_v12  ;;  %v1745_v16 = vand.u32 127, %v449_v13  ;;  %v1217_v20 = vld [vmem:[%s1724_s21 + $0x20] sm:$0xff]   ;;  %v1220_v23 = vld [vmem:[%s1724_s21 + $0x8] sm:$0xff]  }
 0x133   : > { %1013 = vmatprep.subr.bf16.mxu0 %v1491_v14  ;;  %v1221_v24 = vld [vmem:[%s1724_s21] sm:$0xff]  }
 0x134   : > { %vm451_vm2 = vcmp.lt.s32.totalorder %v1745_v16, 8 }
 0x135   : > { %v452_v19 = vsel %vm451_vm2, %v448_v18, inf }
 0x136   : > { %1014 = vmatpush3.bf16.msra.mxu0 %v1215_v15  ;;  %453 = vmin.xlane.f32.xlu0 %v452_v19  ;;  %v340_v25 = vld [vmem:[#allocation5] sm:$0xf]  ;;  %s956_s4 = sshll.u32 %s1862_s13, 3 }
 0x137   : > { %1015 = vmatprep.subr.bf16.mxu0 %v1491_v14  ;;  %s446_s22 = scalar_lea.vmem [#allocation2], %s956_s4 }
 0x13a   : > { %1016 = vmatpush3.bf16.msra.mxu0 %v1216_v17 }
 0x13b   : > { %1017 = vmatprep.subr.bf16.mxu0 %v1491_v14 }
 0x13e   : > { %1018 = vmatpush3.bf16.msra.mxu0 %v1217_v20 }
 0x13f   : > { %1019 = vmatprep.subr.bf16.mxu0 %v1491_v14 }
 0x142   : > { %1020 = vmatpush3.bf16.msra.mxu0 %v1218_v21 }
 0x143   : > { %1021 = vmatprep.subr.bf16.mxu0 %v1491_v14 }
 0x146   : > { %1022 = vmatpush3.bf16.msra.mxu0 %v1219_v22 }
 0x147   : > { %1023 = vmatprep.subr.bf16.mxu0 %v1491_v14 }
 0x14a   : > { %1024 = vmatpush3.bf16.msra.mxu0 %v1220_v23 }
 0x14b   : > { %1025 = vmatprep.subr.bf16.mxu0 %v1491_v14 }
 0x14e   : > { %1026 = vmatpush3.bf16.msra.mxu0 %v1221_v24 }
 0x151   : > { %1028 = vmatmul.mubr.bf16.vlgmr.msra.gmra.mxu0 %v340_v25 }
 0x1bf   : > { %v454_v30 = vpop.xlane.xlu0 %453 }
 0x211   : > { %v439_v26 = vpop.f32.mrf.mxu0 }
 0x212   : > { %447 = vst [vmem:[%s446_s22] sm:$0xff] %v439_v26  ;;  %455 = vmax.xlane.f32.xlu0 %v439_v26 }
 0x213   : > { %v1029_v27 = vpop.f32.mrf.mxu0 }
 0x215   : > { %v442_v28 = vpop.f32.mrf.mxu0 }
 0x217   : > { %v1030_v29 = vpop.f32.mrf.mxu0 }
 0x29b   : > { %v456_v31 = vpop.xlane.xlu0 %455 }
 0x29c   : > { %v457_v32 = vsub.f32 %v456_v31, %v454_v30 }
 0x29e   : > { %v458_v33 = vrot.slane %v457_v32, 4 }
 0x2a0   : > { %v459_v34 = vmax.f32 %v457_v32, %v458_v33 }
 0x2a2   : > { %v460_v35 = vrot.slane %v459_v34, 2 }
 0x2a4   : > { %v461_v36 = vmax.f32 %v459_v34, %v460_v35 }
 0x2a6   : > { %v462_v37 = vrot.slane %v461_v36, 1 }
 0x2a8   : > { %v463_v38 = vmax.f32 %v461_v36, %v462_v37 }
 0x2aa   : > { %465 = vst.msk [vmem:[#allocation6] sm:$0x1] %vm464_vm3, %v463_v38 }
 0x2b1   : > { %v466_v39 = vld [vmem:[#allocation6] sm:$0x1] }
 0x2b2   : > { %1071 = vpush %v466_v39 }
 0x2e3   : > { %s1072_s6 = spop %1071 }
 0x2e4   : > { %p468_p8 = scmp.gt.f32.partialorder %s1072_s6, 0.0 }
 0x2e5   : > { %v472_v40 = vld [vmem:[%s446_s22] sm:$0xff] (%p468_p8)  ;;  %v473_v41 = vld [vmem:[#allocation3] sm:$0xff] (%p468_p8)  ;;  %vm479_vm6 = vcmp.eq.s32.totalorder (%p468_p8), %v1745_v16, 0  ;;  %vm490_vm7 = vcmp.eq.s32.totalorder (%p468_p8), %v1745_v16, 1  ;;  %vm501_vm10 = vcmp.eq.s32.totalorder (%p468_p8), %v1745_v16, 2  ;;  %vm512_vm13 = vcmp.eq.s32.totalorder (%p468_p8), %v1745_v16, 3 }
 0x2e6   : > { %471 = sbr.rel (!%p468_p8) target bundleno = 1886 (0x75e), region = 64  ;;  %474 = vmax.xlane.f32.xlu0 (%p468_p8), %v472_v40  ;;  %vm523_vm0 = vcmp.eq.s32.totalorder (%p468_p8), %v1745_v16, 4  ;;  %vm534_vm3 = vcmp.eq.s32.totalorder (%p468_p8), %v1745_v16, 5 }
 0x2ea   : > { %476 = vmax.xlane.f32.xlu0 (%p468_p8), %v473_v41 }
 0x36f   : > { %v475_v42 = vpop.xlane.xlu0 %474 }
 0x373   : > { %v477_v43 = vpop.xlane.xlu0 %476 }
 0x374   : > { %v478_v44 = vmax.f32 %v475_v42, %v477_v43 }
 0x376   : > { %vm481_vm4 = vcmp.ge.f32.partialorder %v472_v40, %v478_v44  ;;  %vm483_vm5 = vcmp.ge.f32.partialorder %v473_v41, %v478_v44  ;;  %v480_v50 = vsel %vm479_vm6, %v478_v44, -1e+30  ;;  %vm545_vm6 = vcmp.eq.s32.totalorder %v1745_v16, 6 }
 0x377   : > { %v482_v45 = vsel %vm481_vm4, -1e+30, %v472_v40  ;;  %v484_v46 = vsel %vm483_vm5, -1e+30, %v473_v41 }
 0x378   : > { %485 = vmax.xlane.f32.xlu1 %v482_v45 }
 0x37c   : > { %487 = vmax.xlane.f32.xlu1 %v484_v46 }
 0x401   : > { %v486_v47 = vpop.xlane.xlu1 %485 }
 0x405   : > { %v488_v48 = vpop.xlane.xlu1 %487 }
 0x406   : > { %v489_v49 = vmax.f32 %v486_v47, %v488_v48 }
 0x408   : > { %v491_v51 = vsel %vm490_vm7, %v489_v49, %v480_v50  ;;  %vm494_vm8 = vcmp.ge.f32.partialorder %v484_v46, %v489_v49  ;;  %vm492_vm9 = vcmp.ge.f32.partialorder %v482_v45, %v489_v49 }
 0x409   : > { %v495_v52 = vsel %vm494_vm8, -1e+30, %v484_v46  ;;  %v493_v53 = vsel %vm492_vm9, -1e+30, %v482_v45  ;;  %vm556_vm9 = vcmp.eq.s32.totalorder %v1745_v16, 7 }
 0x40a   : > { %498 = vmax.xlane.f32.xlu1 %v495_v52  ;;  %496 = vmax.xlane.f32.xlu0 %v493_v53 }
 0x493   : > { %v499_v54 = vpop.xlane.xlu1 %498  ;;  %v497_v55 = vpop.xlane.xlu0 %496 }
 0x494   : > { %v500_v56 = vmax.f32 %v497_v55, %v499_v54 }
 0x496   : > { %v502_v57 = vsel %vm501_vm10, %v500_v56, %v491_v51  ;;  %vm505_vm11 = vcmp.ge.f32.partialorder %v495_v52, %v500_v56  ;;  %vm503_vm12 = vcmp.ge.f32.partialorder %v493_v53, %v500_v56 }
 0x497   : > { %v506_v58 = vsel %vm505_vm11, -1e+30, %v495_v52  ;;  %v504_v59 = vsel %vm503_vm12, -1e+30, %v493_v53 }
 0x498   : > { %509 = vmax.xlane.f32.xlu1 %v506_v58  ;;  %507 = vmax.xlane.f32.xlu0 %v504_v59 }
 0x521   : > { %v510_v60 = vpop.xlane.xlu1 %509  ;;  %v508_v61 = vpop.xlane.xlu0 %507 }
 0x522   : > { %v511_v62 = vmax.f32 %v508_v61, %v510_v60 }
 0x524   : > { %v513_v63 = vsel %vm512_vm13, %v511_v62, %v502_v57  ;;  %vm516_vm14 = vcmp.ge.f32.partialorder %v506_v58, %v511_v62  ;;  %vm514_vm15 = vcmp.ge.f32.partialorder %v504_v59, %v511_v62 }
 0x525   : > { %v517_v0 = vsel %vm516_vm14, -1e+30, %v506_v58  ;;  %v515_v1 = vsel %vm514_vm15, -1e+30, %v504_v59 }
 0x526   : > { %520 = vmax.xlane.f32.xlu1 %v517_v0  ;;  %518 = vmax.xlane.f32.xlu0 %v515_v1 }
 0x5af   : > { %v521_v2 = vpop.xlane.xlu1 %520  ;;  %v519_v3 = vpop.xlane.xlu0 %518 }
 0x5b0   : > { %v522_v4 = vmax.f32 %v519_v3, %v521_v2 }
 0x5b2   : > { %v524_v5 = vsel %vm523_vm0, %v522_v4, %v513_v63  ;;  %vm527_vm1 = vcmp.ge.f32.partialorder %v517_v0, %v522_v4  ;;  %vm525_vm2 = vcmp.ge.f32.partialorder %v515_v1, %v522_v4 }
 0x5b3   : > { %v528_v6 = vsel %vm527_vm1, -1e+30, %v517_v0  ;;  %v526_v7 = vsel %vm525_vm2, -1e+30, %v515_v1 }
 0x5b4   : > { %531 = vmax.xlane.f32.xlu1 %v528_v6  ;;  %529 = vmax.xlane.f32.xlu0 %v526_v7 }
 0x63d   : > { %v532_v8 = vpop.xlane.xlu1 %531  ;;  %v530_v9 = vpop.xlane.xlu0 %529 }
 0x63e   : > { %v533_v10 = vmax.f32 %v530_v9, %v532_v8 }
 0x640   : > { %v535_v11 = vsel %vm534_vm3, %v533_v10, %v524_v5  ;;  %vm538_vm4 = vcmp.ge.f32.partialorder %v528_v6, %v533_v10  ;;  %vm536_vm5 = vcmp.ge.f32.partialorder %v526_v7, %v533_v10 }
 0x641   : > { %v539_v12 = vsel %vm538_vm4, -1e+30, %v528_v6  ;;  %v537_v13 = vsel %vm536_vm5, -1e+30, %v526_v7 }
 0x642   : > { %542 = vmax.xlane.f32.xlu1 %v539_v12  ;;  %540 = vmax.xlane.f32.xlu0 %v537_v13 }
 0x6cb   : > { %v543_v14 = vpop.xlane.xlu1 %542  ;;  %v541_v15 = vpop.xlane.xlu0 %540 }
 0x6cc   : > { %v544_v17 = vmax.f32 %v541_v15, %v543_v14 }
 0x6ce   : > { %v546_v18 = vsel %vm545_vm6, %v544_v17, %v535_v11  ;;  %vm549_vm7 = vcmp.ge.f32.partialorder %v539_v12, %v544_v17  ;;  %vm547_vm8 = vcmp.ge.f32.partialorder %v537_v13, %v544_v17 }
 0x6cf   : > { %v550_v19 = vsel %vm549_vm7, -1e+30, %v539_v12  ;;  %v548_v20 = vsel %vm547_vm8, -1e+30, %v537_v13 }
 0x6d0   : > { %553 = vmax.xlane.f32.xlu1 %v550_v19  ;;  %551 = vmax.xlane.f32.xlu0 %v548_v20 }
 0x759   : > { %v554_v21 = vpop.xlane.xlu1 %553  ;;  %v552_v22 = vpop.xlane.xlu0 %551 }
 0x75a   : > { %v555_v23 = vmax.f32 %v552_v22, %v554_v21 }
 0x75c   : > { %v557_v24 = vsel %vm556_vm9, %v555_v23, %v546_v18 }
 0x75d   : > { %558 = vst [vmem:[#allocation3] sm:$0xff] %v557_v24 }
 0x75e PF: > { %s1863_s15 = sld [smem:[#allocation22_spill]] }
 0x764   : > { %p957_p9 = scmp.ne.s32.totalorder %s1863_s15, 1 }
 0x765   : > { %s1864_s28 = sld [smem:[#allocation21_spill]] (!%p957_p9) }
 0x766   : > { %562 = sbr.rel (%p957_p9) target bundleno = 2622 (0xa3e), region = 68 }
 0x76b   : > { %v563_v25 = vld [vmem:[#allocation3] sm:$0xff]  ;;  %v566_v26 = vlaneseq  ;;  %v1493_v27 = vmov 0.0   ;;  %v1222_v28 = vld [vmem:[%s1731_s8 + $0x38] sm:$0xff]   ;;  %v1223_v29 = vld [vmem:[%s1731_s8 + $0x30] sm:$0xff]   ;;  %vm1494_vm11 = vmmov 0   ;;  %s958_s18 = sshll.u32 %s1864_s28, 3 }
 0x76c   : > { %564 = vmax.xlane.f32.xlu0 %v563_v25  ;;  %1031 = vmatprep.subr.bf16.mxu0 %v1493_v27  ;;  %v1224_v31 = vld [vmem:[%s1731_s8 + $0x28] sm:$0xff]   ;;  %v1225_v32 = vld [vmem:[%s1731_s8 + $0x20] sm:$0xff]   ;;  %v1226_v33 = vld [vmem:[%s1731_s8 + $0x18] sm:$0xff]   ;;  %s573_s7 = scalar_lea.vmem [#allocation2], %s958_s18  ;;  %p970_p12 = scmp.ne.s32.totalorder %s1864_s28, 1 }
 0x76d   : > { %v567_v16 = vand.u32 127, %v566_v26  ;;  %1032 = vmatpush3.bf16.msra.mxu0 %v1222_v28  ;;  %v1227_v34 = vld [vmem:[%s1731_s8 + $0x10] sm:$0xff]   ;;  %v1228_v35 = vld [vmem:[%s1731_s8 + $0x8] sm:$0xff]   ;;  %v1229_v36 = vld [vmem:[%s1731_s8] sm:$0xff]   ;;  %1047 = vmatprep.mubr.msk.bf16.mxu0 %vm1494_vm11, %v1493_v27 }
 0x76e   : > { %1033 = vmatprep.subr.bf16.mxu0 %v1493_v27  ;;  %v574_v37 = vld [vmem:[%s573_s7] sm:$0xff]  ;;  %v581_v45 = vld [vmem:[#allocation4] sm:$0xff] }
 0x76f   : > { %vm568_vm10 = vcmp.lt.s32.totalorder %v567_v16, 8 }
 0x770   : > { %v569_v30 = vsel %vm568_vm10, %v563_v25, inf }
 0x771   : > { %570 = vmin.xlane.f32.xlu0 %v569_v30  ;;  %1034 = vmatpush3.bf16.msra.mxu0 %v1223_v29 }
 0x772   : > { %1035 = vmatprep.subr.bf16.mxu0 %v1493_v27 }
 0x775   : > { %1036 = vmatpush3.bf16.msra.mxu0 %v1224_v31 }
 0x776   : > { %1037 = vmatprep.subr.bf16.mxu0 %v1493_v27 }
 0x779   : > { %1038 = vmatpush3.bf16.msra.mxu0 %v1225_v32 }
 0x77a   : > { %1039 = vmatprep.subr.bf16.mxu0 %v1493_v27 }
 0x77d   : > { %1040 = vmatpush3.bf16.msra.mxu0 %v1226_v33 }
 0x77e   : > { %1041 = vmatprep.subr.bf16.mxu0 %v1493_v27 }
 0x781   : > { %1042 = vmatpush3.bf16.msra.mxu0 %v1227_v34 }
 0x782   : > { %1043 = vmatprep.subr.bf16.mxu0 %v1493_v27 }
 0x785   : > { %1044 = vmatpush3.bf16.msra.mxu0 %v1228_v35 }
 0x786   : > { %1045 = vmatprep.subr.bf16.mxu0 %v1493_v27 }
 0x789   : > { %1046 = vmatpush3.bf16.msra.mxu0 %v1229_v36 }
 0x7f5   : > { %v565_v38 = vpop.xlane.xlu0 %564 }
 0x7f6   : > { %v576_v39 = vsub.f32 %v574_v37, %v565_v38 }
 0x7f8   : > { %v577_v40 = vmul.f32 10.0, %v576_v39 }
 0x7fa   : > { %v578_v41 = vmul.f32 1.442695, %v577_v40  ;;  %v571_v42 = vpop.xlane.xlu0 %570 }
 0x7fb   : > { %vm575_vm12 = vcmp.ge.f32.partialorder %v574_v37, %v571_v42 }
 0x7fc   : > { %1230 = vpow2.f32 %v578_v41  ;;  %vm967_vm13 = vmpackc.low %vm575_vm12, %vm575_vm12 }
 0x809   : > { %v1231_v43 = vpop.eup %1230 }
 0x80a   : > { %v968_v44 = vpack.c.bf16 %v1231_v43, %v1231_v43 }
 0x80c   : > { %1048 = vmatmul.mubr.msk.bf16.vlgmr.msra.gmra.mxu0 %vm967_vm13, %v968_v44 }
 0x8cc   : > { %v681_v46 = vpop.f32.mrf.mxu0 }
 0x8cd   : > { %v687_v47 = vadd.f32 %v681_v46, %v581_v45 }
 0x8ce   : > { %v1049_v48 = vpop.f32.mrf.mxu0  ;;  %692 = sbr.rel (%p970_p12) target bundleno = 2622 (0xa3e), region = 72 }
 0x8cf   : > { %688 = vst [vmem:[#allocation4] sm:$0xff] %v687_v47 }
 0x8d0   : > { %v684_v49 = vpop.f32.mrf.mxu0 }
 0x8d2   : > { %v1050_v50 = vpop.f32.mrf.mxu0 }
 0x8d3   : > { %v1495_v53 = vmov 0.0   ;;  %v1232_v54 = vld [vmem:[#allocation13 + $0x38] sm:$0xff]   ;;  %v1233_v55 = vld [vmem:[#allocation13 + $0x30] sm:$0xff]   ;;  %v1234_v56 = vld [vmem:[#allocation13 + $0x28] sm:$0xff]   ;;  %vm1496_vm14 = vmmov 0  }
 0x8d4   : > { %1051 = vmatprep.subr.bf16.mxu0 %v1495_v53  ;;  %v1235_v57 = vld [vmem:[#allocation13 + $0x20] sm:$0xff]   ;;  %v1236_v58 = vld [vmem:[#allocation13 + $0x18] sm:$0xff]   ;;  %1067 = vmatprep.mubr.msk.bf16.mxu0 %vm1496_vm14, %v1495_v53  ;;  %v1237_v59 = vld [vmem:[#allocation13 + $0x10] sm:$0xff]  }
 0x8d5   : > { %1052 = vmatpush3.bf16.msra.mxu0 %v1232_v54  ;;  %v1238_v60 = vld [vmem:[#allocation13 + $0x8] sm:$0xff]   ;;  %v1239_v61 = vld [vmem:[#allocation13] sm:$0xff]  }
 0x8d6   : > { %v693_v51 = vld [vmem:[#allocation4] sm:$0xff]  ;;  %1053 = vmatprep.subr.bf16.mxu0 %v1495_v53 }
 0x8d7   : > { %v694_v52 = vmul.f32 %v693_v51, %v693_v51 }
 0x8d9   : > { %695 = vadd.xlane.f32.xlu0 %v694_v52  ;;  %1054 = vmatpush3.bf16.msra.mxu0 %v1233_v55 }
 0x8da   : > { %1055 = vmatprep.subr.bf16.mxu0 %v1495_v53 }
 0x8dd   : > { %1056 = vmatpush3.bf16.msra.mxu0 %v1234_v56 }
 0x8de   : > { %1057 = vmatprep.subr.bf16.mxu0 %v1495_v53 }
 0x8e1   : > { %1058 = vmatpush3.bf16.msra.mxu0 %v1235_v57 }
 0x8e2   : > { %1059 = vmatprep.subr.bf16.mxu0 %v1495_v53 }
 0x8e5   : > { %1060 = vmatpush3.bf16.msra.mxu0 %v1236_v58 }
 0x8e6   : > { %1061 = vmatprep.subr.bf16.mxu0 %v1495_v53 }
 0x8e9   : > { %1062 = vmatpush3.bf16.msra.mxu0 %v1237_v59 }
 0x8ea   : > { %1063 = vmatprep.subr.bf16.mxu0 %v1495_v53 }
 0x8ed   : > { %1064 = vmatpush3.bf16.msra.mxu0 %v1238_v60 }
 0x8ee   : > { %1065 = vmatprep.subr.bf16.mxu0 %v1495_v53 }
 0x8f1   : > { %1066 = vmatpush3.bf16.msra.mxu0 %v1239_v61 }
 0x962   : > { %v696_v62 = vpop.xlane.xlu0 %695 }
 0x963   : > { %v697_v63 = vmax.f32 %v696_v62, 1e-24 }
 0x965   : > { %1240 = vrsqrt.f32 %v697_v63 }
 0x972   : > { %v1241_v0 = vpop.eup %1240 }
 0x973   : > { %v699_v1 = vmul.f32 %v1241_v0, %v693_v51 }
 0x975   : > { %v700_v2 = vpack.c.bf16 %v699_v1, %v699_v1 }
 0x977   : > { %1068 = vmatmul.mubr.bf16.vlgmr.msra.gmra.mxu0 %v700_v2 }
 0xa37   : > { %v799_v3 = vpop.f32.mrf.mxu0 }
 0xa38   : > { %805 = vst [vmem:[#allocation15] sm:$0xff] %v799_v3 }
 0xa39   : > { %v1069_v4 = vpop.f32.mrf.mxu0 }
 0xa3b   : > { %v802_v5 = vpop.f32.mrf.mxu0 }
 0xa3d   : > { %v1070_v6 = vpop.f32.mrf.mxu0 }
 0xa3e PF: > { %p1108_p1 = scmp.eq.s32.totalorder %s1628_s12, 3  ;;  %s1497_s14 = smov [#allocation15]  }
 0xa3f   : > { %s815_s29 = sshll.u32 %s1497_s14, 4  ;;  %s816_s29 = int_to_ptr.vmem [resolvable:$true] %s815_s29 }
 0xa40   : > { %s1350_s0 = scalar_lea.vmem %s816_s29, 128  ;;  %p1357_p4 = scmp.lt.s32.totalorder %s816_s29, %s816_s29 }
 0xa41   : > { %p1351_p2 = scmp.ne.s32.totalorder %s816_s29, %s1350_s0  ;;  %p1358_p10 = scmp.lt.s32.totalorder %s1350_s0, %s1350_s0 }
 0xa43   : > { %p1352_p3 = pnand %p1351_p2, %p1108_p1  ;;  %p1359_p7 = por %p1358_p10, %p1357_p4 }
 0xa45   : > { %p1353_p5 = pneg %p1352_p3 }
 0xa47   : > { %p1360_p11 = pnand %p1359_p7, %p1353_p5 }
 0xa49   : > { %1363 = shalt.err (!%p1360_p11)
}
 0xa4a   : > { %s1865_s10 = sld [smem:[#allocation28_spill]] }
 0xa50   : > { %1086 = dma.vmem_to_hbm [thread:$0]  (%p1108_p1), %s816_s29, 128, %s1865_s10, [#allocation9]  }
 0xa51   : > { %1435 = dma.done.wait (%p1108_p1), [#allocation9], 128  }
 0xa52   : > { %1437 = vsyncadd (%p1108_p1), [#allocation9], 4294967168 }
 0xa53 PF: > { %s20_s25 = sadd.s32 1, %s1480_s25   ;;  %s1866_s21 = sld [smem:[#allocation23_spill]] }
 0xa54   : > { %p17_p13 = scmp.ge.s32.totalorder %s20_s25, 6   ;;  %s1867_s22 = sld [smem:[#allocation24_spill]] }
 0xa55   : > { %s1868_s15 = smov %s1444_s16  ;;  %s1869_s16 = smov %s1448_s17 }
 0xa56   : > { %s1870_s17 = smov %s1697_s30  ;;  %s1871_s18 = smov %s1456_s19 }
 0xa57   : > { %s1872_s19 = smov %s1460_s20  ;;  %s1873_s20 = smov %s1608_s2 }
 0xa58   : > { %s1874_s23 = smov %s1877_s26  ;;  %s1875_s24 = smov %s1881_s27 }
 0xa59   :  { %19 = sbr.rel (!%p17_p13) target bundleno = 15 (0xf), region = 117 }
 0xa5e   :  { %828 = vsyncpa [#allocation8], 1 }
 0xa5f   :  { %830 = vsyncpa [#allocation8 + $0x1], 1 }
 0xa60   :  { %831 = vsyncpa [#allocation11], 1 }
 0xa61   :  { %833 = vsyncpa [#allocation11 + $0x1], 1 }
 0xa62   :  { %834 = vsyncpa [#allocation14], 1 }
 0xa63   :  { %835 = vsyncpa [#allocation9], 1 }
 0xa64   :  { %837 = vsyncpa [#allocation9 + $0x1], 1 }

</bundles_post_ra>
